<compile_context>
chip_gen: v7x
topology: tpu7x:2x2x1
jax: 0.10.0
libtpu: 0.0.40
codegen_flags: <defaults>
</compile_context>

<pallas_src>
import jax
import jax.numpy as jnp
from jax.experimental import pallas as pl
from jax.experimental.pallas import tpu as pltpu


def _round_up(x: int, m: int) -> int:
    return ((x + m - 1) // m) * m


def _make_pad_kernel(h: int, w: int, t: int):
    def pad_kernel(x_ref, o_ref):
        p = o_ref.shape[0]
        # Interior: input goes to the top-left corner (written exactly once).
        o_ref[:, :h, :w] = x_ref[...].astype(o_ref.dtype)
        # Right pad strip (rows < h, cols >= w).
        if t > w:
            o_ref[:, :h, w:] = jnp.zeros((p, h, t - w), o_ref.dtype)
        # Bottom pad strip (rows >= h, full width).
        if t > h:
            o_ref[:, h:, :] = jnp.zeros((p, t - h, t), o_ref.dtype)

    return pad_kernel


def _choose_planes_per_block(n_planes: int, h: int, w: int, t: int,
                             itemsize: int) -> int:
    # Sublane multiple for this dtype: f32 -> 8, bf16 -> 16, int8 -> 32.
    sub = max(8, 32 // max(itemsize, 1))
    # VMEM-resident bytes per plane with the tiled-layout padding the hardware
    # actually uses, double-buffered for both the input and the output block.
    in_plane = _round_up(h, sub) * _round_up(w, 128) * itemsize
    out_plane = _round_up(t, sub) * _round_up(t, 128) * itemsize
    per_plane = 2 * (in_plane + out_plane)
    budget = 16 * 1024 * 1024  # conservative: safe on v7x (32 MiB scoped default)
    p = max(1, budget // per_plane)
    # Keep >= 2 grid steps when possible so both TensorCores on v7x get work.
    p = min(p, max(1, -(-n_planes // 2)))
    return min(p, n_planes)


def pad_to_square(image: jax.Array, target_size: int) -> jax.Array:
    """Pads the last two dims of `image` (..., H, W) to (target_size, target_size)
    with zeros on the right / bottom.  Matches PyTorch PadToSquare.forward."""
    *lead, h, w = image.shape
    assert h <= target_size and w <= target_size, "target_size must be >= H, W"

    n_planes = 1
    for d in lead:
        n_planes *= d
    n_planes = max(n_planes, 1)
    x_flat = image.reshape((n_planes, h, w))

    p = _choose_planes_per_block(n_planes, h, w, target_size,
                                 x_flat.dtype.itemsize)
    grid = (pl.cdiv(n_planes, p),)

    out_flat = pl.pallas_call(
        _make_pad_kernel(h, w, target_size),
        out_shape=jax.ShapeDtypeStruct((n_planes, target_size, target_size),
                                       image.dtype),
        grid_spec=pltpu.PrefetchScalarGridSpec(
            num_scalar_prefetch=0,
            grid=grid,
            in_specs=[pl.BlockSpec((p, h, w), lambda i: (i, 0, 0))],
            out_specs=pl.BlockSpec((p, target_size, target_size),
                                   lambda i: (i, 0, 0)),
        ),
        compiler_params=pltpu.CompilerParams(
            dimension_semantics=("parallel",)),
    )(x_flat)

    return out_flat.reshape(tuple(lead) + (target_size, target_size))


if __name__ == "__main__":
    key = jax.random.PRNGKey(0)
    N, C, H, W = 2, 4, 16, 16
    target_size = 32

    x = jax.random.normal(key, (N, C, H, W), dtype=jnp.float32)

    out = pad_to_square(x, target_size)
    out = jax.block_until_ready(out)

    # Reference check against plain-JAX padding (same semantics as F.pad).
    ref = jnp.pad(x, ((0, 0), (0, 0), (0, target_size - H), (0, target_size - W)),
                  constant_values=0.0)
    assert out.shape == (N, C, target_size, target_size)
    assert out.dtype == x.dtype
    assert jnp.array_equal(out, ref)

    print("KERNEL_OK")
</pallas_src>

<mosaic_0001>
module attributes {stable_mosaic.version = 11 : i64} {
  func.func @pad_kernel(%arg0: i32, %arg1: memref<4x16x16xf32, #tpu.memory_space<vmem>>, %arg2: memref<4x32x32xf32, #tpu.memory_space<vmem>>) attributes {dimension_semantics = [#tpu.dimension_semantics<parallel>], iteration_bounds = array<i64: 2>, scalar_prefetch = 0 : i64, scratch_operands = 0 : i64, tpu.core_type = #tpu.core_type<tc>, window_params = [{transform_indices = @transform_0, window_bounds = array<i64: 4, 16, 16>}, {transform_indices = @transform_1, window_bounds = array<i64: 4, 32, 32>}]} {
    %c0 = arith.constant 0 : index
    %c0_0 = arith.constant 0 : index
    %c0_1 = arith.constant 0 : index
    %0 = vector.load %arg1[%c0, %c0_0, %c0_1] : memref<4x16x16xf32, #tpu.memory_space<vmem>>, vector<4x16x16xf32>
    %c0_2 = arith.constant 0 : index
    %c0_3 = arith.constant 0 : index
    %c0_4 = arith.constant 0 : index
    %1 = vector.load %arg2[%c0_2, %c0_3, %c0_4] : memref<4x32x32xf32, #tpu.memory_space<vmem>>, vector<4x16x16xf32>
    tpu.vector_store %arg2[%c0_2, %c0_3, %c0_4], %0 {strides = array<i32>} : memref<4x32x32xf32, #tpu.memory_space<vmem>>, vector<4x16x16xf32>,
    %cst = arith.constant 0.000000e+00 : f32
    %2 = vector.broadcast %cst : f32 to vector<4x16x16xf32>
    %c0_5 = arith.constant 0 : index
    %c0_6 = arith.constant 0 : index
    %c16 = arith.constant 16 : index
    %3 = vector.load %arg2[%c0_5, %c0_6, %c16] : memref<4x32x32xf32, #tpu.memory_space<vmem>>, vector<4x16x16xf32>
    tpu.vector_store %arg2[%c0_5, %c0_6, %c16], %2 {strides = array<i32>} : memref<4x32x32xf32, #tpu.memory_space<vmem>>, vector<4x16x16xf32>,
    %cst_7 = arith.constant 0.000000e+00 : f32
    %4 = vector.broadcast %cst_7 : f32 to vector<4x16x32xf32>
    %c0_8 = arith.constant 0 : index
    %c16_9 = arith.constant 16 : index
    %c0_10 = arith.constant 0 : index
    %5 = vector.load %arg2[%c0_8, %c16_9, %c0_10] : memref<4x32x32xf32, #tpu.memory_space<vmem>>, vector<4x16x32xf32>
    tpu.vector_store %arg2[%c0_8, %c16_9, %c0_10], %4 {strides = array<i32>} : memref<4x32x32xf32, #tpu.memory_space<vmem>>, vector<4x16x32xf32>,
    return
  }
  func.func @transform_0(%arg0: i32) -> (i32, i32, i32) {
    %c0_i32 = arith.constant 0 : i32
    %c0_i32_0 = arith.constant 0 : i32
    %c0_i32_1 = arith.constant 0 : i32
    return %arg0, %c0_i32, %c0_i32_0 : i32, i32, i32
  }
  func.func @transform_1(%arg0: i32) -> (i32, i32, i32) {
    %c0_i32 = arith.constant 0 : i32
    %c0_i32_0 = arith.constant 0 : i32
    %c0_i32_1 = arith.constant 0 : i32
    return %arg0, %c0_i32, %c0_i32_0 : i32, i32, i32
  }
}

</mosaic_0001>

<bundles_post_ra>
// kernel: tpu_custom_call.1
= control target key start
LH: loop header
LB: loop body
LE: loop exit
PB: predicated region body
PF: predicated region fallthrough
CT: control target
= control target key end

     0   :  { %6 = vsyncpa [#allocation3], 0  ;;  %s663_s0 = inlined_call_operand.hbm [shape: f32[8,16,16], index: 0, kind: input, shape index: {}]   ;;  %s664_s1 = inlined_call_operand.hbm [shape: f32[8,32,32], index: 1, kind: output, shape index: {}]  }
   0x1   :  { %8 = vsyncpa [#allocation3 + $0x1], 0 }
   0x2   :  { %9 = vsyncpa [#allocation4], 0 }
   0x3   :  { %11 = vsyncpa [#allocation4 + $0x1], 0  ;;  %s447_s6 = smov 0   ;;  %s449_s7 = smov 0  }
   0x4   :  { %s451_s8 = smov 0   ;;  %s453_s9 = smov 0  }
   0x5 LB: > { %s468_s10 = sadd.s32 4294967295, %s428_s9   ;;  %s261_s11 = sadd.s32 4294967294, %s428_s9   ;;  %s428_s9 = sphi %s453_s9, %s677_s9   ;;  %s424_s8 = sphi %s451_s8, %s676_s8   ;;  %s420_s7 = sphi %s449_s7, %s675_s7   ;;  %s416_s6 = sphi %s447_s6, %s674_s6  }
   0x6   : > { %s472_s12 = sadd.s32 1, %s428_s9   ;;  %s24_s13 = sadd.s32 1, %s424_s8 }
   0x7   : > { %s21_s14 = ssub.s32 %s428_s9, %s472_s12  ;;  %p31_p0 = scmp.ne.s32.totalorder %s424_s8, %s420_s7 }
   0x8   : > { %p22_p1 = scmp.eq.s32.totalorder %s21_s14, 0  ;;  %p32_p2 = scmp.eq.s32.totalorder %s428_s9, 0 }
   0x9   : > { %p37_p3 = scmp.ne.s32.totalorder %s420_s7, %s416_s6  ;;  %p38_p4 = scmp.eq.s32.totalorder %s468_s10, 0 }
   0xa   : > { %s484_s15 = scalar_select %p22_p1, %s424_s8, %s24_s13  }
   0xb   : > { %p486_p5 = por %p32_p2, %p31_p0  ;;  %p490_p6 = por %p38_p4, %p37_p3 }
   0xc   : > { %p61_p7 = scmp.eq.s32.totalorder %s468_s10, 1  ;;  %p67_p8 = scmp.eq.s32.totalorder %s261_s11, 1 }
   0xd   : > { %p293_p10 = scmp.lt.s32.totalorder %s428_s9, 2  ;;  %s87_s20 = sand.u32 1, %s424_s8  }
   0xe   : > { %p497_p11 = por %p61_p7, %p31_p0  ;;  %p501_p12 = por %p67_p8, %p37_p3 }
   0xf   : > { %s278_s21 = sshll.u32 %s428_s9, 10  ;;  %s264_s22 = sshll.u32 %s87_s20, 6 }
  0x10   : > { %s668_s18 = scalar_select %p497_p11, 1, 0 }
  0x11   : > { %s669_s19 = scalar_select %p501_p12, 1, 0 }
  0x12   : > { %s510_s25 = scalar_lea.hbm %s663_s0, %s278_s21  ;;  %s91_s26 = scalar_lea.vmem [#allocation2], %s264_s22 }
  0x13   : > { %s99_s27 = sshll.u32 %s91_s26, 4  ;;  %p514_p13 = pnand %p293_p10, %p486_p5  ;;  %s518_s27 = int_to_ptr.vmem [resolvable:$true] %s99_s27 }
  0x14   : > { %s520_s29 = scalar_lea.sflag [#allocation3], %s87_s20  ;;  %s332_s30 = scalar_lea.hbm %s510_s25, 1024 }
  0x15   : > { %p333_p0 = scmp.ne.s32.totalorder %s510_s25, %s332_s30  ;;  %p334_p1 = pneg %p514_p13 }
  0x16   : > { %s337_s4 = scalar_lea.hbm %s663_s0, 2048  ;;  %p338_p4 = scmp.lt.u32.totalorder %s510_s25, %s663_s0 }
  0x17   : > { %p335_p2 = pnand %p334_p1, %p333_p0  ;;  %p339_p5 = scmp.lt.u32.totalorder %s337_s4, %s332_s30 }
  0x18   : > { %p341_p8 = scmp.lt.u32.totalorder %s332_s30, %s510_s25 }
  0x19   : > { %p336_p3 = pneg %p335_p2  ;;  %p340_p7 = por %p339_p5, %p338_p4 }
  0x1b   : > { %p342_p10 = por %p341_p8, %p340_p7 }
  0x1d   : > { %p343_p9 = pnand %p342_p10, %p336_p3 }
  0x1f   : > { %346 = shalt.err (!%p343_p9)
}
  0x20   : > { %s347_s13 = scalar_lea.vmem %s518_s27, 1024  ;;  %s430_s14 = smov [#allocation2]  }
  0x21   : > { %p348_p0 = scmp.ne.s32.totalorder %s518_s27, %s347_s13  ;;  %s352_s16 = sshll.u32 %s430_s14, 4  ;;  %s353_s16 = int_to_ptr.vmem [resolvable:$false] %s352_s16 }
  0x22   : > { %s354_s20 = scalar_lea.vmem %s353_s16, 2048  ;;  %p355_p11 = scmp.lt.s32.totalorder %s518_s27, %s353_s16 }
  0x23   : > { %p350_p2 = pnand %p348_p0, %p334_p1  ;;  %p356_p4 = scmp.lt.s32.totalorder %s354_s20, %s347_s13 }
  0x25   : > { %p351_p12 = pneg %p350_p2  ;;  %p357_p5 = por %p356_p4, %p355_p11 }
  0x27   : > { %p358_p7 = pnand %p357_p5, %p351_p12 }
  0x29   : > { %361 = shalt.err (!%p358_p7)
}
  0x2a   : > { %s431_s21 = smov 128   ;;  %s432_s22 = smov 8  }
  0x2b   : > { %288 = dma.hbm_to_vmem [thread:$0]  (!%p514_p13), %s510_s25, 1024, %s518_s27, %s520_s29, %s431_s21, %s431_s21, %s432_s22  }
  0x2c   : > { %p268_p9 = scmp.ge.s32.totalorder %s428_s9, 1  ;;  %p107_p1 = scmp.lt.s32.totalorder %s428_s9, 3 }
  0x2e   : > { %p108_p3 = pnand %p268_p9, %p107_p1 }
  0x2f   : > { %s551_s23 = sand.u32 (!%p108_p3), 1, %s420_s7  }
  0x30   : > { %111 = sbr.rel (%p108_p3) target bundleno = 84 (0x54), region = 24  ;;  %s269_s24 = sshll.u32 (!%p108_p3), %s551_s23, 6 }
  0x31   : > { %s114_s26 = scalar_lea.sflag (!%p108_p3), [#allocation3], %s551_s23  ;;  %s555_s30 = scalar_lea.vmem (!%p108_p3), [#allocation2], %s269_s24 }
  0x37   : > { %407 = dma.done.wait (%p490_p6), %s114_s26, 1024  }
  0x38   : > { %409 = vsyncadd (%p490_p6), %s114_s26, 4294966272  ;;  %s270_s25 = sshll.u32 %s551_s23, 7  ;;  %vm164_vm0 = vcmask 261120   ;;  %v433_v0 = vmov 0.0   ;;  %vm146_vm1 = vcmask 130048   ;;  %s280_s17 = sshll.u32 %s468_s10, 11 }
  0x39   : > { %s562_s27 = scalar_lea.vmem [#allocation5], %s270_s25  ;;  %vm155_vm2 = vcmask 261248   ;;  %v138_v1 = vld [vmem:[%s555_s30] sm:$0xff]  ;;  %v139_v2 = vld [vmem:[%s555_s30 + $0x8] sm:$0xff]  ;;  %v140_v3 = vld [vmem:[%s555_s30 + $0x10] sm:$0xff]  ;;  %s589_s2 = scalar_lea.hbm %s664_s1, %s280_s17 }
  0x3a   : > { %165 = vst.msk [vmem:[%s562_s27 + $0x10] sm:$0xff] %vm164_vm0, %v433_v0  ;;  %166 = vst.msk [vmem:[%s562_s27 + $0x18] sm:$0xff] %vm164_vm0, %v433_v0  ;;  %s188_s28 = sshll.u32 %s562_s27, 4  ;;  %v141_v4 = vld [vmem:[%s555_s30 + $0x18] sm:$0xff]  ;;  %v142_v5 = vld [vmem:[%s555_s30 + $0x20] sm:$0xff]  ;;  %s174_s3 = scalar_lea.sflag [#allocation4], %s551_s23  ;;  %s591_s28 = int_to_ptr.vmem [resolvable:$true] %s188_s28 }
  0x3b   : > { %167 = vst.msk [vmem:[%s562_s27 + $0x30] sm:$0xff] %vm164_vm0, %v433_v0  ;;  %168 = vst.msk [vmem:[%s562_s27 + $0x38] sm:$0xff] %vm164_vm0, %v433_v0  ;;  %v143_v6 = vld [vmem:[%s555_s30 + $0x28] sm:$0xff]  ;;  %v144_v7 = vld [vmem:[%s555_s30 + $0x30] sm:$0xff]  ;;  %s362_s4 = scalar_lea.vmem %s591_s28, 2048  ;;  %p671_p11 = scmp.ne.s32.totalorder %s668_s18, 0 }
  0x3c   : > { %169 = vst.msk [vmem:[%s562_s27 + $0x50] sm:$0xff] %vm164_vm0, %v433_v0  ;;  %170 = vst.msk [vmem:[%s562_s27 + $0x58] sm:$0xff] %vm164_vm0, %v433_v0  ;;  %v145_v8 = vld [vmem:[%s555_s30 + $0x38] sm:$0xff]  ;;  %p363_p6 = scmp.ne.s32.totalorder %s591_s28, %s362_s4  ;;  %s434_s5 = smov [#allocation5]  }
  0x3d   : > { %171 = vst.msk [vmem:[%s562_s27 + $0x70] sm:$0xff] %vm164_vm0, %v433_v0  ;;  %172 = vst.msk [vmem:[%s562_s27 + $0x78] sm:$0xff] %vm164_vm0, %v433_v0  ;;  %s366_s11 = sshll.u32 %s434_s5, 4  ;;  %s367_s11 = int_to_ptr.vmem [resolvable:$false] %s366_s11 }
  0x3e   : > { %147 = vst.msk [vmem:[%s562_s27] sm:$0xff] %vm146_vm1, %v138_v1  ;;  %148 = vst.msk [vmem:[%s562_s27 + $0x8] sm:$0xff] %vm146_vm1, %v139_v2  ;;  %p364_p12 = pnand %p363_p6, %p671_p11  ;;  %s368_s13 = scalar_lea.vmem %s367_s11, 4096 }
  0x3f   : > { %149 = vst.msk [vmem:[%s562_s27 + $0x20] sm:$0xff] %vm146_vm1, %v140_v3  ;;  %150 = vst.msk [vmem:[%s562_s27 + $0x28] sm:$0xff] %vm146_vm1, %v141_v4  ;;  %p369_p8 = scmp.lt.s32.totalorder %s591_s28, %s367_s11  ;;  %p370_p10 = scmp.lt.s32.totalorder %s368_s13, %s362_s4 }
  0x40   : > { %151 = vst.msk [vmem:[%s562_s27 + $0x40] sm:$0xff] %vm146_vm1, %v142_v5  ;;  %152 = vst.msk [vmem:[%s562_s27 + $0x48] sm:$0xff] %vm146_vm1, %v143_v6  ;;  %p365_p13 = pneg %p364_p12 }
  0x41   : > { %156 = vst.msk [vmem:[%s562_s27] sm:$0xff] %vm155_vm2, %v433_v0  ;;  %157 = vst.msk [vmem:[%s562_s27 + $0x8] sm:$0xff] %vm155_vm2, %v433_v0  ;;  %p371_p0 = por %p370_p10, %p369_p8 }
  0x42   : > { %158 = vst.msk [vmem:[%s562_s27 + $0x20] sm:$0xff] %vm155_vm2, %v433_v0  ;;  %159 = vst.msk [vmem:[%s562_s27 + $0x28] sm:$0xff] %vm155_vm2, %v433_v0 }
  0x43   : > { %153 = vst.msk [vmem:[%s562_s27 + $0x60] sm:$0xff] %vm146_vm1, %v144_v7  ;;  %154 = vst.msk [vmem:[%s562_s27 + $0x68] sm:$0xff] %vm146_vm1, %v145_v8  ;;  %p372_p2 = pnand %p371_p0, %p365_p13 }
  0x44   : > { %160 = vst.msk [vmem:[%s562_s27 + $0x40] sm:$0xff] %vm155_vm2, %v433_v0  ;;  %161 = vst.msk [vmem:[%s562_s27 + $0x48] sm:$0xff] %vm155_vm2, %v433_v0 }
  0x45   : > { %162 = vst.msk [vmem:[%s562_s27 + $0x60] sm:$0xff] %vm155_vm2, %v433_v0  ;;  %163 = vst.msk [vmem:[%s562_s27 + $0x68] sm:$0xff] %vm155_vm2, %v433_v0 }
  0x46   : > { %375 = shalt.err (!%p372_p2)
}
  0x47   : > { %s376_s14 = scalar_lea.hbm %s589_s2, 2048  ;;  %s380_s21 = scalar_lea.hbm %s664_s1, 4096 }
  0x48   : > { %p377_p4 = scmp.ne.s32.totalorder %s589_s2, %s376_s14  ;;  %p381_p9 = scmp.lt.u32.totalorder %s589_s2, %s664_s1 }
  0x49   : > { %p382_p1 = scmp.lt.u32.totalorder %s380_s21, %s376_s14  ;;  %p384_p6 = scmp.lt.u32.totalorder %s376_s14, %s589_s2 }
  0x4a   : > { %p378_p5 = pnand %p377_p4, %p671_p11 }
  0x4b   : > { %p383_p3 = por %p382_p1, %p381_p9 }
  0x4c   : > { %p379_p7 = pneg %p378_p5 }
  0x4d   : > { %p385_p12 = por %p384_p6, %p383_p3 }
  0x4f   : > { %p386_p13 = pnand %p385_p12, %p379_p7 }
  0x51   : > { %389 = shalt.err (!%p386_p13)
}
  0x52   : > { %s435_s26 = smov 128   ;;  %s436_s30 = smov 8  }
  0x53   : > { %283 = dma.vmem_to_hbm [thread:$0]  (%p671_p11), %s591_s28, 2048, %s589_s2, %s174_s3, %s435_s26, %s435_s26, %s436_s30  }
  0x54 PF: > { %s203_s25 = sand.u32 1, %s416_s6   ;;  %p672_p8 = scmp.ne.s32.totalorder %s669_s19, 0 }
  0x55   : > { %p673_p10 = scmp.ge.s32.totalorder %s428_s9, 2  ;;  %s204_s27 = scalar_lea.sflag [#allocation4], %s203_s25 }
  0x57   : > { %p290_p0 = pnand %p673_p10, %p672_p8 }
  0x59   : > { %411 = dma.done.wait (!%p290_p0), %s204_s27, 2048  }
  0x5a   : > { %413 = vsyncadd (!%p290_p0), %s204_s27, 4294965248  ;;  %p14_p2 = scmp.ge.s32.totalorder %s472_s12, 4   ;;  %s674_s6 = smov %s420_s7 }
  0x5b   : > { %s675_s7 = smov %s424_s8  ;;  %s676_s8 = smov %s484_s15 }
  0x5c   : > { %s677_s9 = smov %s472_s12  ;;  %16 = sbr.rel (!%p14_p2) target bundleno = 5 (0x5), region = 69 }
  0x63   :  { %209 = vsyncpa [#allocation3], 1 }
  0x64   :  { %211 = vsyncpa [#allocation3 + $0x1], 1 }
  0x65   :  { %212 = vsyncpa [#allocation4], 1 }
  0x66   :  { %214 = vsyncpa [#allocation4 + $0x1], 1 }

</bundles_post_ra>
